<compile_context>
chip_gen: v5e
topology: v5e:2x2
jax: 0.10.0
libtpu: 0.0.40
codegen_flags: <defaults>
</compile_context>

<pallas_src>
import functools

import jax
import jax.numpy as jnp
from jax.experimental import pallas as pl
from jax.experimental.pallas import tpu as pltpu


def _round_up(x, m):
    return (x + m - 1) // m * m


def _stencil3x3(x, w_ref, lane_edge_masks):
    """3x3 SAME cross-correlation over a flattened (R, Wp) tile.

    `x` must already be zero on every row/column that is outside the valid HxW grid
    but adjacent to it (per-slab halo rows, lane pad columns), so plain rotations give
    the correct zero taps at the borders.  Rows/cols outside the grid hold garbage in
    the result; callers mask or crop them.
    """
    Wp = x.shape[-1]
    # +-1 lane shifts as XLU rotations.
    x_r = pltpu.roll(x, 1, axis=1)         # col c <- x[:, c-1]
    x_l = pltpu.roll(x, Wp - 1, axis=1)    # col c <- x[:, c+1]
    if lane_edge_masks is not None:        # only when W % 128 == 0 (wrap hits real data)
        m_keep_l, m_keep_r = lane_edge_masks
        x_l = x_l * m_keep_l               # zero wrapped column Wp-1
        x_r = x_r * m_keep_r               # zero wrapped column 0
    # Lane-combine once per weight row, then combine the three row taps with two
    # +-1 row shifts.  Wrapped rows land on zero halo rows, and real output rows
    # never read across a batch-slab boundary (each slab has its own halo rows).
    t0 = w_ref[0, 0] * x_r + w_ref[0, 1] * x + w_ref[0, 2] * x_l
    t1 = w_ref[1, 0] * x_r + w_ref[1, 1] * x + w_ref[1, 2] * x_l
    t2 = w_ref[2, 0] * x_r + w_ref[2, 1] * x + w_ref[2, 2] * x_l
    return jnp.roll(t0, 1, axis=0) + t1 + jnp.roll(t2, -1, axis=0)


def _fused_conv_relu_conv_kernel(w1_ref, b1_ref, w2_ref, b2_ref, m_ref,
                                 x_ref, o_ref, *, need_wrap_mask):
    # x_ref : (1, R, Wp), R = TB*(H+2); each batch slab carries its own zero halo rows
    #         (slab-relative rows 0 and H+1) and zero columns >= W.
    # m_ref : (R, Wp) f32 mask: 1 on the real HxW grid, 0 on halo rows / pad columns.
    # o_ref : (1, R, Wp); full tile written, halo rows / pad columns cropped in wrapper.
    x = x_ref[0]
    mask = m_ref[...]

    edges = None
    if need_wrap_mask:
        # W is lane-aligned (W == Wp): lane rotation wraps real data, so the wrapped
        # boundary lane of each shifted view must be zeroed explicitly (two (1,Wp) masks).
        Wp = x.shape[-1]
        lane = jax.lax.broadcasted_iota(jnp.int32, (1, Wp), 1)
        edges = ((lane < Wp - 1).astype(jnp.float32),   # keep-mask for left-shifted view
                 (lane > 0).astype(jnp.float32))        # keep-mask for right-shifted view

    # conv1 + bias + ReLU, restricted to the real grid so conv2 sees proper SAME
    # zero padding of the intermediate (single vmul against the precomputed mask).
    y1 = _stencil3x3(x, w1_ref, edges) + b1_ref[0]
    y1 = jnp.maximum(y1, 0.0) * mask

    # conv2 + bias
    o_ref[0] = _stencil3x3(y1, w2_ref, edges) + b2_ref[0]


def _pick_batch_tile(B, H, Wp, batch_tile):
    # VMEM budget: ~12 live full-width f32 row-sets per tile row (2x in block, 2x out
    # block, mask, spill temporaries) -- keep well under the 32 MiB scoped limit we
    # request, which fits v5e/v6e/v7x.
    rows_budget = max(1, (12 * 1024 * 1024) // (12 * Wp * 4))
    tb_budget = max(1, rows_budget // (H + 2))
    # >=2 parallel grid steps when B>=2 keeps both v7x TensorCores busy and enables
    # DMA/compute pipelining; target up to 4 steps while keeping B_pad minimal.
    nb_target = min(B, 4)
    return max(1, min(batch_tile, tb_budget, -(-B // nb_target)))


def model_forward(x, w1, b1, w2, b2, *, batch_tile=8):
    """Dense-grid forward of conv3x3 -> ReLU -> conv3x3.  x: (B,1,H,W) f32 -> (B,1,H,W)."""
    B, C, H, W = x.shape
    assert C == 1, "module is defined with 1 input / 1 output channel"

    Wp = max(128, _round_up(W, 128))            # lane-dense width, no extra pad column
    TB = _pick_batch_tile(B, H, Wp, batch_tile)
    B_pad = _round_up(B, TB)
    NB = B_pad // TB
    R = TB * (H + 2)                            # batch flattened into the sublane axis

    # Single wrapper pad: batch padding + per-plane halo rows + lane alignment, followed
    # by a free (contiguous) reshape flattening TB planes into one sublane slab.
    xw = jnp.pad(x[:, 0].astype(jnp.float32),
                 ((0, B_pad - B), (1, 1), (0, Wp - W)))          # (B_pad, H+2, Wp)
    xw = xw.reshape(NB, R, Wp)

    # Precomputed f32 grid mask (1 on the real HxW grid).  Its block index is constant
    # across the grid, so it is fetched into VMEM once and reused every step.
    row_ok = jnp.tile(jnp.pad(jnp.ones((H,), jnp.float32), (1, 1)), TB).reshape(R, 1)
    col_ok = (jnp.arange(Wp, dtype=jnp.int32) < W).astype(jnp.float32).reshape(1, Wp)
    mask = row_ok * col_ok                                         # (R, Wp)

    kernel = functools.partial(_fused_conv_relu_conv_kernel,
                               need_wrap_mask=(W == Wp))

    out = pl.pallas_call(
        kernel,
        out_shape=jax.ShapeDtypeStruct((NB, R, Wp), jnp.float32),
        grid=(NB,),
        in_specs=[
            pl.BlockSpec(memory_space=pltpu.MemorySpace.SMEM),     # w1 (3,3)
            pl.BlockSpec(memory_space=pltpu.MemorySpace.SMEM),     # b1 (1,)
            pl.BlockSpec(memory_space=pltpu.MemorySpace.SMEM),     # w2 (3,3)
            pl.BlockSpec(memory_space=pltpu.MemorySpace.SMEM),     # b2 (1,)
            pl.BlockSpec((R, Wp), lambda b: (0, 0)),               # mask (grid-invariant)
            pl.BlockSpec((1, R, Wp), lambda b: (b, 0, 0)),         # input slab
        ],
        out_specs=pl.BlockSpec((1, R, Wp), lambda b: (b, 0, 0)),
        compiler_params=pltpu.CompilerParams(
            dimension_semantics=("parallel",),
            vmem_limit_bytes=32 * 1024 * 1024),
        cost_estimate=pl.CostEstimate(
            flops=int(2 * 18 * NB * R * Wp),                       # two 9-tap MAC stencils
            transcendentals=0,
            bytes_accessed=int(4 * (2 * NB * R * Wp + R * Wp)),
        ),
    )(w1, b1, w2, b2, mask, xw)

    # Crop halo rows, lane padding and batch padding; restore NCHW.
    out = out.reshape(B_pad, H + 2, Wp)[:B, 1:H + 1, :W]
    return out[:, None, :, :]


if __name__ == "__main__":
    key = jax.random.PRNGKey(0)
    k_x, k_w1, k_b1, k_w2, k_b2 = jax.random.split(key, 5)

    B, C, H, W = 2, 1, 16, 16
    x = jax.random.normal(k_x, (B, C, H, W), dtype=jnp.float32)

    # parameters implied by the module: 1->1 channels, 3x3 kernels, bias
    w1 = jax.random.normal(k_w1, (3, 3), dtype=jnp.float32) * 0.3
    b1 = jax.random.normal(k_b1, (1,), dtype=jnp.float32) * 0.1
    w2 = jax.random.normal(k_w2, (3, 3), dtype=jnp.float32) * 0.3
    b2 = jax.random.normal(k_b2, (1,), dtype=jnp.float32) * 0.1

    y = model_forward(x, w1, b1, w2, b2)
    jax.block_until_ready(y)

    # dense-grid reference (equivalent of the Minkowski sparse conv on a fully dense grid)
    def ref(xin):
        xi = xin[:, 0]
        y1 = jax.lax.conv_general_dilated(
            xi[:, None], w1[None, None], (1, 1), "SAME",
            dimension_numbers=("NCHW", "OIHW", "NCHW"))[:, 0] + b1[0]
        y1 = jnp.maximum(y1, 0.0)
        y2 = jax.lax.conv_general_dilated(
            y1[:, None], w2[None, None], (1, 1), "SAME",
            dimension_numbers=("NCHW", "OIHW", "NCHW"))[:, 0] + b2[0]
        return y2[:, None]

    ref_y = ref(x)
    assert y.shape == ref_y.shape
    assert jnp.allclose(y, ref_y, atol=1e-4, rtol=1e-4), "mismatch vs. dense reference"
    print("KERNEL_OK")
</pallas_src>

<mosaic_0001>
module attributes {stable_mosaic.version = 11 : i64} {
  func.func @_fused_conv_relu_conv_kernel(%arg0: i32, %arg1: memref<3x3xf32, #tpu.memory_space<smem>>, %arg2: memref<1xf32, #tpu.memory_space<smem>>, %arg3: memref<3x3xf32, #tpu.memory_space<smem>>, %arg4: memref<1xf32, #tpu.memory_space<smem>>, %arg5: memref<18x128xf32, #tpu.memory_space<vmem>>, %arg6: memref<1x18x128xf32, #tpu.memory_space<vmem>>, %arg7: memref<1x18x128xf32, #tpu.memory_space<vmem>>) attributes {dimension_semantics = [#tpu.dimension_semantics<parallel>], iteration_bounds = array<i64: 2>, scalar_prefetch = 0 : i64, scratch_operands = 0 : i64, tpu.core_type = #tpu.core_type<tc>, window_params = [{transform_indices = @transform_0, window_bounds = array<i64: 3, 3>}, {transform_indices = @transform_1, window_bounds = array<i64: 1>}, {transform_indices = @transform_2, window_bounds = array<i64: 3, 3>}, {transform_indices = @transform_3, window_bounds = array<i64: 1>}, {pipeline_mode = #tpu.pipeline_mode<synchronous>, transform_indices = @transform_4, window_bounds = array<i64: 18, 128>}, {transform_indices = @transform_5, window_bounds = array<i64: 1, 18, 128>}, {transform_indices = @transform_6, window_bounds = array<i64: 1, 18, 128>}]} {
    %c0 = arith.constant 0 : index
    %c0_0 = arith.constant 0 : index
    %c0_1 = arith.constant 0 : index
    %0 = vector.load %arg6[%c0, %c0_0, %c0_1] : memref<1x18x128xf32, #tpu.memory_space<vmem>>, vector<1x18x128xf32>
    %1 = vector.shape_cast %0 : vector<1x18x128xf32> to vector<18x128xf32>
    %c0_2 = arith.constant 0 : index
    %c0_3 = arith.constant 0 : index
    %2 = vector.load %arg5[%c0_2, %c0_3] : memref<18x128xf32, #tpu.memory_space<vmem>>, vector<18x128xf32>
    %c1_i32 = arith.constant 1 : i32
    %3 = tpu.dynamic_rotate %1 by %c1_i32 dim 1 : vector<18x128xf32>, i32 -> vector<18x128xf32>
    %c127_i32 = arith.constant 127 : i32
    %4 = tpu.dynamic_rotate %1 by %c127_i32 dim 1 : vector<18x128xf32>, i32 -> vector<18x128xf32>
    %c0_4 = arith.constant 0 : index
    %c0_5 = arith.constant 0 : index
    %5 = memref.load %arg1[%c0_4, %c0_5] : memref<3x3xf32, #tpu.memory_space<smem>>
    %6 = vector.broadcast %5 : f32 to vector<18x128xf32>
    %7 = arith.mulf %6, %3 : vector<18x128xf32>
    %c0_6 = arith.constant 0 : index
    %c1 = arith.constant 1 : index
    %8 = memref.load %arg1[%c0_6, %c1] : memref<3x3xf32, #tpu.memory_space<smem>>
    %9 = vector.broadcast %8 : f32 to vector<18x128xf32>
    %10 = arith.mulf %9, %1 : vector<18x128xf32>
    %11 = arith.addf %7, %10 : vector<18x128xf32>
    %c0_7 = arith.constant 0 : index
    %c2 = arith.constant 2 : index
    %12 = memref.load %arg1[%c0_7, %c2] : memref<3x3xf32, #tpu.memory_space<smem>>
    %13 = vector.broadcast %12 : f32 to vector<18x128xf32>
    %14 = arith.mulf %13, %4 : vector<18x128xf32>
    %15 = arith.addf %11, %14 : vector<18x128xf32>
    %c1_8 = arith.constant 1 : index
    %c0_9 = arith.constant 0 : index
    %16 = memref.load %arg1[%c1_8, %c0_9] : memref<3x3xf32, #tpu.memory_space<smem>>
    %17 = vector.broadcast %16 : f32 to vector<18x128xf32>
    %18 = arith.mulf %17, %3 : vector<18x128xf32>
    %c1_10 = arith.constant 1 : index
    %c1_11 = arith.constant 1 : index
    %19 = memref.load %arg1[%c1_10, %c1_11] : memref<3x3xf32, #tpu.memory_space<smem>>
    %20 = vector.broadcast %19 : f32 to vector<18x128xf32>
    %21 = arith.mulf %20, %1 : vector<18x128xf32>
    %22 = arith.addf %18, %21 : vector<18x128xf32>
    %c1_12 = arith.constant 1 : index
    %c2_13 = arith.constant 2 : index
    %23 = memref.load %arg1[%c1_12, %c2_13] : memref<3x3xf32, #tpu.memory_space<smem>>
    %24 = vector.broadcast %23 : f32 to vector<18x128xf32>
    %25 = arith.mulf %24, %4 : vector<18x128xf32>
    %26 = arith.addf %22, %25 : vector<18x128xf32>
    %c2_14 = arith.constant 2 : index
    %c0_15 = arith.constant 0 : index
    %27 = memref.load %arg1[%c2_14, %c0_15] : memref<3x3xf32, #tpu.memory_space<smem>>
    %28 = vector.broadcast %27 : f32 to vector<18x128xf32>
    %29 = arith.mulf %28, %3 : vector<18x128xf32>
    %c2_16 = arith.constant 2 : index
    %c1_17 = arith.constant 1 : index
    %30 = memref.load %arg1[%c2_16, %c1_17] : memref<3x3xf32, #tpu.memory_space<smem>>
    %31 = vector.broadcast %30 : f32 to vector<18x128xf32>
    %32 = arith.mulf %31, %1 : vector<18x128xf32>
    %33 = arith.addf %29, %32 : vector<18x128xf32>
    %c2_18 = arith.constant 2 : index
    %c2_19 = arith.constant 2 : index
    %34 = memref.load %arg1[%c2_18, %c2_19] : memref<3x3xf32, #tpu.memory_space<smem>>
    %35 = vector.broadcast %34 : f32 to vector<18x128xf32>
    %36 = arith.mulf %35, %4 : vector<18x128xf32>
    %37 = arith.addf %33, %36 : vector<18x128xf32>
    %38 = vector.extract_strided_slice %15 {offsets = [17, 0], sizes = [1, 128], strides = [1, 1]} : vector<18x128xf32> to vector<1x128xf32>
    %39 = vector.extract_strided_slice %15 {offsets = [0, 0], sizes = [17, 128], strides = [1, 1]} : vector<18x128xf32> to vector<17x128xf32>
    %40 = tpu.concatenate %38, %39 in 0 : vector<1x128xf32>, vector<17x128xf32> -> vector<18x128xf32>
    %41 = arith.addf %40, %26 : vector<18x128xf32>
    %42 = vector.extract_strided_slice %37 {offsets = [1, 0], sizes = [17, 128], strides = [1, 1]} : vector<18x128xf32> to vector<17x128xf32>
    %43 = vector.extract_strided_slice %37 {offsets = [0, 0], sizes = [1, 128], strides = [1, 1]} : vector<18x128xf32> to vector<1x128xf32>
    %44 = tpu.concatenate %42, %43 in 0 : vector<17x128xf32>, vector<1x128xf32> -> vector<18x128xf32>
    %45 = arith.addf %41, %44 : vector<18x128xf32>
    %c0_20 = arith.constant 0 : index
    %46 = memref.load %arg2[%c0_20] : memref<1xf32, #tpu.memory_space<smem>>
    %47 = vector.broadcast %46 : f32 to vector<18x128xf32>
    %48 = arith.addf %45, %47 : vector<18x128xf32>
    %cst = arith.constant 0.000000e+00 : f32
    %49 = vector.broadcast %cst : f32 to vector<18x128xf32>
    %50 = arith.maximumf %48, %49 : vector<18x128xf32>
    %51 = arith.mulf %50, %2 : vector<18x128xf32>
    %c1_i32_21 = arith.constant 1 : i32
    %52 = tpu.dynamic_rotate %51 by %c1_i32_21 dim 1 : vector<18x128xf32>, i32 -> vector<18x128xf32>
    %c127_i32_22 = arith.constant 127 : i32
    %53 = tpu.dynamic_rotate %51 by %c127_i32_22 dim 1 : vector<18x128xf32>, i32 -> vector<18x128xf32>
    %c0_23 = arith.constant 0 : index
    %c0_24 = arith.constant 0 : index
    %54 = memref.load %arg3[%c0_23, %c0_24] : memref<3x3xf32, #tpu.memory_space<smem>>
    %55 = vector.broadcast %54 : f32 to vector<18x128xf32>
    %56 = arith.mulf %55, %52 : vector<18x128xf32>
    %c0_25 = arith.constant 0 : index
    %c1_26 = arith.constant 1 : index
    %57 = memref.load %arg3[%c0_25, %c1_26] : memref<3x3xf32, #tpu.memory_space<smem>>
    %58 = vector.broadcast %57 : f32 to vector<18x128xf32>
    %59 = arith.mulf %58, %51 : vector<18x128xf32>
    %60 = arith.addf %56, %59 : vector<18x128xf32>
    %c0_27 = arith.constant 0 : index
    %c2_28 = arith.constant 2 : index
    %61 = memref.load %arg3[%c0_27, %c2_28] : memref<3x3xf32, #tpu.memory_space<smem>>
    %62 = vector.broadcast %61 : f32 to vector<18x128xf32>
    %63 = arith.mulf %62, %53 : vector<18x128xf32>
    %64 = arith.addf %60, %63 : vector<18x128xf32>
    %c1_29 = arith.constant 1 : index
    %c0_30 = arith.constant 0 : index
    %65 = memref.load %arg3[%c1_29, %c0_30] : memref<3x3xf32, #tpu.memory_space<smem>>
    %66 = vector.broadcast %65 : f32 to vector<18x128xf32>
    %67 = arith.mulf %66, %52 : vector<18x128xf32>
    %c1_31 = arith.constant 1 : index
    %c1_32 = arith.constant 1 : index
    %68 = memref.load %arg3[%c1_31, %c1_32] : memref<3x3xf32, #tpu.memory_space<smem>>
    %69 = vector.broadcast %68 : f32 to vector<18x128xf32>
    %70 = arith.mulf %69, %51 : vector<18x128xf32>
    %71 = arith.addf %67, %70 : vector<18x128xf32>
    %c1_33 = arith.constant 1 : index
    %c2_34 = arith.constant 2 : index
    %72 = memref.load %arg3[%c1_33, %c2_34] : memref<3x3xf32, #tpu.memory_space<smem>>
    %73 = vector.broadcast %72 : f32 to vector<18x128xf32>
    %74 = arith.mulf %73, %53 : vector<18x128xf32>
    %75 = arith.addf %71, %74 : vector<18x128xf32>
    %c2_35 = arith.constant 2 : index
    %c0_36 = arith.constant 0 : index
    %76 = memref.load %arg3[%c2_35, %c0_36] : memref<3x3xf32, #tpu.memory_space<smem>>
    %77 = vector.broadcast %76 : f32 to vector<18x128xf32>
    %78 = arith.mulf %77, %52 : vector<18x128xf32>
    %c2_37 = arith.constant 2 : index
    %c1_38 = arith.constant 1 : index
    %79 = memref.load %arg3[%c2_37, %c1_38] : memref<3x3xf32, #tpu.memory_space<smem>>
    %80 = vector.broadcast %79 : f32 to vector<18x128xf32>
    %81 = arith.mulf %80, %51 : vector<18x128xf32>
    %82 = arith.addf %78, %81 : vector<18x128xf32>
    %c2_39 = arith.constant 2 : index
    %c2_40 = arith.constant 2 : index
    %83 = memref.load %arg3[%c2_39, %c2_40] : memref<3x3xf32, #tpu.memory_space<smem>>
    %84 = vector.broadcast %83 : f32 to vector<18x128xf32>
    %85 = arith.mulf %84, %53 : vector<18x128xf32>
    %86 = arith.addf %82, %85 : vector<18x128xf32>
    %87 = vector.extract_strided_slice %64 {offsets = [17, 0], sizes = [1, 128], strides = [1, 1]} : vector<18x128xf32> to vector<1x128xf32>
    %88 = vector.extract_strided_slice %64 {offsets = [0, 0], sizes = [17, 128], strides = [1, 1]} : vector<18x128xf32> to vector<17x128xf32>
    %89 = tpu.concatenate %87, %88 in 0 : vector<1x128xf32>, vector<17x128xf32> -> vector<18x128xf32>
    %90 = arith.addf %89, %75 : vector<18x128xf32>
    %91 = vector.extract_strided_slice %86 {offsets = [1, 0], sizes = [17, 128], strides = [1, 1]} : vector<18x128xf32> to vector<17x128xf32>
    %92 = vector.extract_strided_slice %86 {offsets = [0, 0], sizes = [1, 128], strides = [1, 1]} : vector<18x128xf32> to vector<1x128xf32>
    %93 = tpu.concatenate %91, %92 in 0 : vector<17x128xf32>, vector<1x128xf32> -> vector<18x128xf32>
    %94 = arith.addf %90, %93 : vector<18x128xf32>
    %c0_41 = arith.constant 0 : index
    %95 = memref.load %arg4[%c0_41] : memref<1xf32, #tpu.memory_space<smem>>
    %96 = vector.broadcast %95 : f32 to vector<18x128xf32>
    %97 = arith.addf %94, %96 : vector<18x128xf32>
    %c0_42 = arith.constant 0 : index
    %c0_43 = arith.constant 0 : index
    %c0_44 = arith.constant 0 : index
    %98 = vector.load %arg7[%c0_42, %c0_43, %c0_44] : memref<1x18x128xf32, #tpu.memory_space<vmem>>, vector<1x18x128xf32>
    %99 = vector.shape_cast %98 : vector<1x18x128xf32> to vector<18x128xf32>
    %100 = vector.shape_cast %97 : vector<18x128xf32> to vector<1x18x128xf32>
    tpu.vector_store %arg7[%c0_42, %c0_43, %c0_44], %100 {strides = array<i32>} : memref<1x18x128xf32, #tpu.memory_space<vmem>>, vector<1x18x128xf32>,
    return
  }
  func.func @transform_0(%arg0: i32) -> (i32, i32) {
    %c0_i32 = arith.constant 0 : i32
    %c0_i32_0 = arith.constant 0 : i32
    %c0_i32_1 = arith.constant 0 : i32
    return %c0_i32, %c0_i32_0 : i32, i32
  }
  func.func @transform_1(%arg0: i32) -> i32 {
    %c0_i32 = arith.constant 0 : i32
    %c0_i32_0 = arith.constant 0 : i32
    return %c0_i32 : i32
  }
  func.func @transform_2(%arg0: i32) -> (i32, i32) {
    %c0_i32 = arith.constant 0 : i32
    %c0_i32_0 = arith.constant 0 : i32
    %c0_i32_1 = arith.constant 0 : i32
    return %c0_i32, %c0_i32_0 : i32, i32
  }
  func.func @transform_3(%arg0: i32) -> i32 {
    %c0_i32 = arith.constant 0 : i32
    %c0_i32_0 = arith.constant 0 : i32
    return %c0_i32 : i32
  }
  func.func @transform_4(%arg0: i32) -> (i32, i32) {
    %c0_i32 = arith.constant 0 : i32
    %c0_i32_0 = arith.constant 0 : i32
    %c0_i32_1 = arith.constant 0 : i32
    return %c0_i32, %c0_i32_0 : i32, i32
  }
  func.func @transform_5(%arg0: i32) -> (i32, i32, i32) {
    %c0_i32 = arith.constant 0 : i32
    %c0_i32_0 = arith.constant 0 : i32
    %c0_i32_1 = arith.constant 0 : i32
    return %arg0, %c0_i32, %c0_i32_0 : i32, i32, i32
  }
  func.func @transform_6(%arg0: i32) -> (i32, i32, i32) {
    %c0_i32 = arith.constant 0 : i32
    %c0_i32_0 = arith.constant 0 : i32
    %c0_i32_1 = arith.constant 0 : i32
    return %arg0, %c0_i32, %c0_i32_0 : i32, i32, i32
  }
}

</mosaic_0001>

<bundles_post_ra>
// kernel: tpu_custom_call.1
= control target key start
LH: loop header
LB: loop body
LE: loop exit
PB: predicated region body
PF: predicated region fallthrough
CT: control target
= control target key end

     0   :  { %s823_s0 = inlined_call_operand.vmem [shape: f32[3,3], index: 0, kind: input, shape index: {}]   ;;  %s824_s1 = inlined_call_operand.<no memory space> [shape: f32[1], index: 1, kind: input, shape index: {}]   ;;  %s825_s2 = inlined_call_operand.vmem [shape: f32[3,3], index: 2, kind: input, shape index: {}]   ;;  %s826_s3 = inlined_call_operand.<no memory space> [shape: f32[1], index: 3, kind: input, shape index: {}]   ;;  %s827_s4 = inlined_call_operand.vmem [shape: f32[18,128], index: 4, kind: input, shape index: {}]   ;;  %s828_s5 = inlined_call_operand.vmem [shape: f32[2,18,128], index: 5, kind: input, shape index: {}]   ;;  %s829_s6 = inlined_call_operand.vmem [shape: f32[2,18,128], index: 6, kind: output, shape index: {}]  }
   0x1   :  { %11 = sst [smem:[#allocation2]] %s824_s1 }
   0x2   :  { %12 = sst [smem:[#allocation3]] %s826_s3 }
   0x3   :  { %13 = vsyncpa [#allocation5], 0 }
   0x4   :  { %14 = vsyncpa [#allocation7], 0  ;;  %s755_s25 = smov 0  }
   0x5 LB: > { %s603_s26 = sadd.s32 4294967295, %s708_s25   ;;  %p605_p0 = scmp.ge.s32.totalorder %s708_s25, 1  ;;  %s708_s25 = sphi %s755_s25, %s20_s25  }
   0x6   : > { %p182_p1 = scmp.lt.s32.totalorder %s708_s25, 3  ;;  %s194_s28 = sshll.u32 %s823_s0, 4  ;;  %s195_s28 = int_to_ptr.vmem [resolvable:$true] %s194_s28 }
   0x7   : > { %p648_p3 = scmp.eq.s32.totalorder %s603_s26, 0  ;;  %s207_s30 = sshll.u32 %s825_s2, 4  ;;  %s208_s30 = int_to_ptr.vmem [resolvable:$true] %s207_s30 }
   0x8   : > { %p183_p2 = pnand %p605_p0, %p182_p1  ;;  %s710_s7 = smov [#allocation4]  }
   0x9   : > { %s711_s8 = smov [#allocation6]  }
   0xa   : > { %p641_p4 = pneg %p183_p2 }
   0xb   : > { %234 = sbr.rel (%p183_p2) target bundleno = 308 (0x134), region = 44 }
   0xc   : > { %p642_p5 = pnand %p648_p3, %p641_p4 }
   0xe   : > { %644 = dma.vmem_to_smem (!%p642_p5), %s195_s28, 64, %s710_s7, [#allocation5]  }
   0xf   : > { %647 = dma.vmem_to_smem (!%p642_p5), %s208_s30, 64, %s711_s8, [#allocation7]  }
  0x10   : > { %699 = dma.done.wait (%p648_p3), [#allocation5], 64  }
  0x11   : > { %701 = vsyncadd (%p648_p3), [#allocation5], 4294967232 }
  0x12   : > { %703 = dma.done.wait (%p648_p3), [#allocation7], 64  }
  0x13   : > { %705 = vsyncadd (%p648_p3), [#allocation7], 4294967232 }
  0x14   : > { %246 = sfence }
  0x15   : > { %p271_p6 = scmp.lt.s32.totalorder %s603_s26, 1  ;;  %s712_s13 = smov 1   ;;  %vm367_vm0 = vcmask 1040384   ;;  %vm383_vm1 = vcmask 1046528  }
  0x16   : > { %s713_s14 = smov 127   ;;  %s615_s15 = sld [smem:[#allocation4 + $0x2]] }
  0x17   : > { %s831_s26 = smov (!%p271_p6, %s603_s26), 1  ;;  %s618_s16 = sld [smem:[#allocation4 + $0x82]] }
  0x18   : > { %s632_s9 = smul.u32 24, %s831_s26  ;;  %s621_s17 = sld [smem:[#allocation4 + $0x102]] }
  0x19   : > { %s299_s18 = sld [smem:[#allocation4]] }
  0x1a   : > { %s275_s12 = scalar_lea.vmem %s828_s5, %s632_s9  ;;  %s614_s19 = sld [smem:[#allocation4 + $0x1]] }
  0x1b   : > { %v283_v0 = vld [vmem:[%s275_s12 + $0x10] sm:$0x3]  ;;  %v281_v1 = vld [vmem:[%s275_s12] sm:$0xff]  ;;  %v282_v2 = vld [vmem:[%s275_s12 + $0x8] sm:$0xff]  ;;  %s620_s20 = sld [smem:[#allocation4 + $0x101]] }
  0x1c   : > { %291 = vrot.lane.b32.xlu1 %v283_v0, %s712_s13  ;;  %287 = vrot.lane.b32.xlu0 %v281_v1, %s712_s13  ;;  %s619_s21 = sld [smem:[#allocation4 + $0x100]]  ;;  %v313_v12 = vstv %s615_s15 }
  0x1d   : > { %295 = vrot.lane.b32.xlu2 %v282_v2, %s713_s14  ;;  %s617_s22 = sld [smem:[#allocation4 + $0x81]]  ;;  %v334_v13 = vstv %s618_s16 }
  0x1e   : > { %s616_s23 = sld [smem:[#allocation4 + $0x80]]  ;;  %v355_v16 = vstv %s621_s17 }
  0x1f   : > { %v300_v4 = vstv %s299_s18  ;;  %s398_s24 = sld [smem:[#allocation2]] }
  0x20   : > { %v305_v5 = vstv %s614_s19  ;;  %s622_s7 = sld [smem:[#allocation6 + $0x1]] }
  0x21   : > { %v347_v6 = vstv %s620_s20  ;;  %v308_v11 = vmul.f32 %v305_v5, %v283_v0  ;;  %v306_v18 = vmul.f32 %v305_v5, %v281_v1  ;;  %v307_v30 = vmul.f32 %v305_v5, %v282_v2  ;;  %s625_s8 = sld [smem:[#allocation6 + $0x81]]  ;;  %s280_s20 = scalar_lea.vmem %s829_s6, %s632_s9 }
  0x22   : > { %v342_v9 = vstv %s619_s21  ;;  %v348_v19 = vmul.f32 %v347_v6, %v281_v1  ;;  %v350_v21 = vmul.f32 %v347_v6, %v283_v0  ;;  %v349_v34 = vmul.f32 %v347_v6, %v282_v2  ;;  %s628_s10 = sld [smem:[#allocation6 + $0x101]] }
  0x23   : > { %v326_v14 = vstv %s617_s22  ;;  %s421_s11 = sld [smem:[#allocation6]] }
  0x24   : > { %293 = vrot.lane.b32.xlu1 %v281_v1, %s713_s14  ;;  %289 = vrot.lane.b32.xlu0 %v282_v2, %s712_s13  ;;  %v321_v17 = vstv %s616_s23  ;;  %v329_v25 = vmul.f32 %v326_v14, %v283_v0  ;;  %v327_v26 = vmul.f32 %v326_v14, %v281_v1  ;;  %v328_v33 = vmul.f32 %v326_v14, %v282_v2  ;;  %s624_s12 = sld [smem:[#allocation6 + $0x80]] }
  0x25   : > { %297 = vrot.lane.b32.xlu2 %v283_v0, %s713_s14  ;;  %s627_s15 = sld [smem:[#allocation6 + $0x100]] }
  0x26   : > { %s623_s16 = sld [smem:[#allocation6 + $0x2]] }
  0x27   : > { %s629_s17 = sld [smem:[#allocation6 + $0x102]] }
  0x28   : > { %s626_s18 = sld [smem:[#allocation6 + $0x82]] }
  0x77   : > { %v296_v3 = vpop.permute.xlu2 %295 }
  0x78   : > { %v315_v28 = vmul.f32 %v313_v12, %v296_v3  ;;  %v336_v49 = vmul.f32 %v334_v13, %v296_v3  ;;  %v357_v53 = vmul.f32 %v355_v16, %v296_v3 }
  0x7f   : > { %v298_v15 = vpop.permute.xlu2 %297 }
  0x80   : > { %v316_v27 = vmul.f32 %v313_v12, %v298_v15  ;;  %v337_v31 = vmul.f32 %v334_v13, %v298_v15  ;;  %v358_v32 = vmul.f32 %v355_v16, %v298_v15 }
  0x8e   : > { %v292_v7 = vpop.permute.xlu1 %291  ;;  %v288_v8 = vpop.permute.xlu0 %287 }
  0x8f   : > { %v303_v10 = vmul.f32 %v300_v4, %v292_v7  ;;  %v345_v20 = vmul.f32 %v342_v9, %v292_v7  ;;  %v301_v22 = vmul.f32 %v300_v4, %v288_v8  ;;  %v343_v23 = vmul.f32 %v342_v9, %v288_v8 }
  0x90   : > { %v324_v29 = vmul.f32 %v321_v17, %v292_v7  ;;  %v322_v37 = vmul.f32 %v321_v17, %v288_v8 }
  0x91   : > { %v311_v24 = vadd.f32 %v308_v11, %v303_v10  ;;  %v353_v35 = vadd.f32 %v350_v21, %v345_v20  ;;  %v309_v36 = vadd.f32 %v306_v18, %v301_v22  ;;  %v351_v38 = vadd.f32 %v348_v19, %v343_v23  ;;  %v284_v22 = vld [vmem:[%s827_s4] sm:$0xff] }
  0x92   : > { %v332_v45 = vadd.f32 %v329_v25, %v324_v29  ;;  %v330_v54 = vadd.f32 %v327_v26, %v322_v37  ;;  %v399_v11 = vstv %s398_s24  ;;  %v286_v25 = vld [vmem:[%s827_s4 + $0x10] sm:$0x3]  ;;  %v285_v26 = vld [vmem:[%s827_s4 + $0x8] sm:$0xff]  ;;  %v443_v37 = vstv %s624_s12 }
  0x93   : > { %v319_v41 = vadd.f32 %v316_v27, %v311_v24  ;;  %v361_v57 = vadd.f32 %v358_v32, %v353_v35  ;;  %v448_v35 = vstv %s625_s8 }
  0x94   : > { %v340_v61 = vadd.f32 %v337_v31, %v332_v45 }
  0x95   : > { %v363_v58 = vrot.slane %v319_v41, 1  ;;  %v371_v0 = vrot.slane %v319_v41, 7  ;;  %v387_v8 = vrot.slane %v361_v57, 1 }
  0x96   : > { %v294_v39 = vpop.permute.xlu1 %293  ;;  %v290_v40 = vpop.permute.xlu0 %289 }
  0x97   : > { %v314_v42 = vmul.f32 %v313_v12, %v294_v39  ;;  %v356_v43 = vmul.f32 %v355_v16, %v294_v39  ;;  %v302_v44 = vmul.f32 %v300_v4, %v290_v40  ;;  %v335_v46 = vmul.f32 %v334_v13, %v294_v39 }
  0x98   : > { %v323_v47 = vmul.f32 %v321_v17, %v290_v40  ;;  %v344_v48 = vmul.f32 %v342_v9, %v290_v40  ;;  %v435_v39 = vstv %s623_s16 }
  0x99   : > { %v317_v50 = vadd.f32 %v314_v42, %v309_v36  ;;  %v359_v51 = vadd.f32 %v356_v43, %v351_v38  ;;  %v310_v52 = vadd.f32 %v307_v30, %v302_v44  ;;  %v338_v62 = vadd.f32 %v335_v46, %v330_v54 }
  0x9a   : > { %v331_v55 = vadd.f32 %v328_v33, %v323_v47  ;;  %v352_v56 = vadd.f32 %v349_v34, %v344_v48  ;;  %v422_v33 = vstv %s421_s11  ;;  %v427_v34 = vstv %s622_s7 }
  0x9b   : > { %v368_v59 = vrot.slane %v317_v50, 7  ;;  %v318_v60 = vadd.f32 %v315_v28, %v310_v52  ;;  %v392_v2 = vrot.slane %v359_v51, 7  ;;  %v384_v6 = vrot.slane %v359_v51, 1 }
  0x9c   : > { %v360_v63 = vadd.f32 %v357_v53, %v352_v56  ;;  %v339_v7 = vadd.f32 %v336_v49, %v331_v55  ;;  %v464_v36 = vstv %s627_s15  ;;  %v469_v38 = vstv %s628_s10 }
  0x9d   : > { %v376_v1 = vsel %vm367_vm0, %v363_v58, %v368_v59  ;;  %v369_v4 = vrot.slane %v318_v60, 7  ;;  %v394_v15 = vsel %vm367_vm0, %v387_v8, %v392_v2  ;;  %v477_v43 = vstv %s629_s17 }
  0x9e   : > { %v377_v5 = vadd.f32 %v376_v1, %v338_v62  ;;  %v385_v3 = vrot.slane %v360_v63, 1  ;;  %v456_v53 = vstv %s626_s18 }
  0x9f   : > { %v370_v9 = vsel %vm367_vm0, %v368_v59, %v369_v4  ;;  %v372_v10 = vsel %vm367_vm0, %v369_v4, %v371_v0 }
  0xa0   : > { %v378_v12 = vadd.f32 %v370_v9, %v339_v7  ;;  %v379_v13 = vadd.f32 %v372_v10, %v340_v61  ;;  %v386_v14 = vsel %vm383_vm1, %v384_v6, %v385_v3  ;;  %v388_v16 = vsel %vm383_vm1, %v385_v3, %v387_v8 }
  0xa1   : > { %v395_v17 = vadd.f32 %v386_v14, %v377_v5 }
  0xa2   : > { %v396_v18 = vadd.f32 %v388_v16, %v378_v12  ;;  %v397_v19 = vadd.f32 %v394_v15, %v379_v13 }
  0xa3   : > { %v400_v20 = vadd.f32 %v399_v11, %v395_v17 }
  0xa4   : > { %v401_v21 = vadd.f32 %v399_v11, %v396_v18  ;;  %v402_v23 = vadd.f32 %v399_v11, %v397_v19 }
  0xa5   : > { %v403_v24 = vmax.f32 %v400_v20, 0.0 }
  0xa6   : > { %v405_v27 = vmax.f32 %v402_v23, 0.0  ;;  %v404_v28 = vmax.f32 %v401_v21, 0.0 }
  0xa7   : > { %v406_v29 = vmul.f32 %v403_v24, %v284_v22 }
  0xa8   : > { %v408_v30 = vmul.f32 %v405_v27, %v286_v25  ;;  %v407_v31 = vmul.f32 %v404_v28, %v285_v26 }
  0xa9   : > { %409 = vrot.lane.b32.xlu0 %v406_v29, %s712_s13  ;;  %v428_v46 = vmul.f32 %v427_v34, %v406_v29  ;;  %v449_v47 = vmul.f32 %v448_v35, %v406_v29  ;;  %v470_v51 = vmul.f32 %v469_v38, %v406_v29 }
  0xaa   : > { %413 = vrot.lane.b32.xlu2 %v408_v30, %s712_s13  ;;  %411 = vrot.lane.b32.xlu1 %v407_v31, %s712_s13  ;;  %v430_v48 = vmul.f32 %v427_v34, %v408_v30  ;;  %v472_v52 = vmul.f32 %v469_v38, %v408_v30  ;;  %v451_v57 = vmul.f32 %v448_v35, %v408_v30  ;;  %s518_s13 = sld [smem:[#allocation3]] }
  0xab   : > { %v429_v61 = vmul.f32 %v427_v34, %v407_v31  ;;  %v450_v62 = vmul.f32 %v448_v35, %v407_v31  ;;  %v471_v4 = vmul.f32 %v469_v38, %v407_v31 }
  0xb1   : > { %415 = vrot.lane.b32.xlu0 %v406_v29, %s713_s14 }
  0xb2   : > { %419 = vrot.lane.b32.xlu2 %v408_v30, %s713_s14  ;;  %417 = vrot.lane.b32.xlu1 %v407_v31, %s713_s14 }
 0x104   : > { %v414_v32 = vpop.permute.xlu2 %413 }
 0x105   : > { %v425_v42 = vmul.f32 %v422_v33, %v414_v32  ;;  %v467_v45 = vmul.f32 %v464_v36, %v414_v32  ;;  %v446_v49 = vmul.f32 %v443_v37, %v414_v32 }
 0x107   : > { %v433_v56 = vadd.f32 %v430_v48, %v425_v42  ;;  %v475_v60 = vadd.f32 %v472_v52, %v467_v45  ;;  %v454_v0 = vadd.f32 %v451_v57, %v446_v49  ;;  %v519_v42 = vstv %s518_s13 }
 0x10c   : > { %v420_v40 = vpop.permute.xlu2 %419 }
 0x10d   : > { %v438_v50 = vmul.f32 %v435_v39, %v420_v40  ;;  %v480_v54 = vmul.f32 %v477_v43, %v420_v40  ;;  %v459_v2 = vmul.f32 %v456_v53, %v420_v40 }
 0x10f   : > { %v441_v1 = vadd.f32 %v438_v50, %v433_v56  ;;  %v483_v5 = vadd.f32 %v480_v54, %v475_v60  ;;  %v462_v34 = vadd.f32 %v459_v2, %v454_v0 }
 0x111   : > { %v485_v18 = vrot.slane %v441_v1, 1  ;;  %v492_v22 = vrot.slane %v441_v1, 7  ;;  %v507_v26 = vrot.slane %v483_v5, 1 }
 0x11b   : > { %v410_v41 = vpop.permute.xlu0 %409 }
 0x11c   : > { %v412_v44 = vpop.permute.xlu1 %411  ;;  %v423_v55 = vmul.f32 %v422_v33, %v410_v41  ;;  %v465_v58 = vmul.f32 %v464_v36, %v410_v41  ;;  %v444_v7 = vmul.f32 %v443_v37, %v410_v41 }
 0x11d   : > { %v424_v59 = vmul.f32 %v422_v33, %v412_v44  ;;  %v466_v63 = vmul.f32 %v464_v36, %v412_v44  ;;  %v445_v3 = vmul.f32 %v443_v37, %v412_v44 }
 0x11e   : > { %v431_v6 = vadd.f32 %v428_v46, %v423_v55  ;;  %v473_v9 = vadd.f32 %v470_v51, %v465_v58  ;;  %v452_v23 = vadd.f32 %v449_v47, %v444_v7 }
 0x11f   : > { %v432_v10 = vadd.f32 %v429_v61, %v424_v59  ;;  %v474_v14 = vadd.f32 %v471_v4, %v466_v63  ;;  %v453_v27 = vadd.f32 %v450_v62, %v445_v3 }
 0x123   : > { %v416_v8 = vpop.permute.xlu0 %415 }
 0x124   : > { %v436_v11 = vmul.f32 %v435_v39, %v416_v8  ;;  %v478_v12 = vmul.f32 %v477_v43, %v416_v8  ;;  %v418_v13 = vpop.permute.xlu1 %417  ;;  %v457_v15 = vmul.f32 %v456_v53, %v416_v8 }
 0x125   : > { %v437_v16 = vmul.f32 %v435_v39, %v418_v13  ;;  %v479_v17 = vmul.f32 %v477_v43, %v418_v13  ;;  %v458_v21 = vmul.f32 %v456_v53, %v418_v13 }
 0x126   : > { %v439_v19 = vadd.f32 %v436_v11, %v431_v6  ;;  %v481_v20 = vadd.f32 %v478_v12, %v473_v9  ;;  %v460_v30 = vadd.f32 %v457_v15, %v452_v23 }
 0x127   : > { %v440_v24 = vadd.f32 %v437_v16, %v432_v10  ;;  %v482_v25 = vadd.f32 %v479_v17, %v474_v14  ;;  %v461_v37 = vadd.f32 %v458_v21, %v453_v27 }
 0x128   : > { %v489_v28 = vrot.slane %v439_v19, 7  ;;  %v512_v29 = vrot.slane %v481_v20, 7  ;;  %v504_v31 = vrot.slane %v481_v20, 1 }
 0x129   : > { %v490_v32 = vrot.slane %v440_v24, 7  ;;  %v505_v33 = vrot.slane %v482_v25, 1 }
 0x12a   : > { %v497_v35 = vsel %vm367_vm0, %v485_v18, %v489_v28  ;;  %v514_v36 = vsel %vm367_vm0, %v507_v26, %v512_v29 }
 0x12b   : > { %v498_v38 = vadd.f32 %v497_v35, %v460_v30  ;;  %v491_v39 = vsel %vm367_vm0, %v489_v28, %v490_v32  ;;  %v493_v40 = vsel %vm367_vm0, %v490_v32, %v492_v22  ;;  %v506_v41 = vsel %vm383_vm1, %v504_v31, %v505_v33 }
 0x12c   : > { %v499_v43 = vadd.f32 %v491_v39, %v461_v37  ;;  %v500_v44 = vadd.f32 %v493_v40, %v462_v34  ;;  %v508_v45 = vsel %vm383_vm1, %v505_v33, %v507_v26 }
 0x12d   : > { %v515_v46 = vadd.f32 %v506_v41, %v498_v38 }
 0x12e   : > { %v516_v47 = vadd.f32 %v508_v45, %v499_v43  ;;  %v517_v48 = vadd.f32 %v514_v36, %v500_v44 }
 0x12f   : > { %v520_v49 = vadd.f32 %v519_v42, %v515_v46 }
 0x130   : > { %v521_v50 = vadd.f32 %v519_v42, %v516_v47  ;;  %v522_v51 = vadd.f32 %v519_v42, %v517_v48 }
 0x131   : > { %523 = vst [vmem:[%s280_s20] sm:$0xff] %v520_v49 }
 0x132   : > { %524 = vst [vmem:[%s280_s20 + $0x8] sm:$0xff] %v521_v50 }
 0x133   : > { %525 = vst [vmem:[%s280_s20 + $0x10] sm:$0x3] %v522_v51 }
 0x134 PF: > { %s20_s25 = sadd.s32 1, %s708_s25  }
 0x135   : > { %p17_p7 = scmp.ge.s32.totalorder %s20_s25, 4  }
 0x137   :  { %19 = sbr.rel (!%p17_p7) target bundleno = 5 (0x5), region = 83 }
 0x13c   :  { %547 = vsyncpa [#allocation5], 1 }
 0x13d   :  { %549 = vsyncpa [#allocation5 + $0x1], 1 }
 0x13e   :  { %550 = vsyncpa [#allocation7], 1 }

</bundles_post_ra>
